<compile_context>
chip_gen: v7x
topology: tpu7x:2x2x1
jax: 0.10.0
libtpu: 0.0.40
codegen_flags: <defaults>
</compile_context>

<pallas_src>
import functools

import jax
import jax.numpy as jnp
from jax.experimental import pallas as pl
from jax.experimental.pallas import tpu as pltpu


_TK_TARGET = 4096  # target reduction tile (lane-aligned)


def _round_up(x, m):
    return ((x + m - 1) // m) * m


def _num_tensorcores_per_chip():
    # Best-effort: v7x has 2 TensorCores per chip; v5e/v6e have 1.
    try:
        kind = jax.devices()[0].device_kind.lower()
        return 2 if "v7" in kind else 1
    except Exception:  # pragma: no cover - defensive
        return 1


def _batch_tiling(B, two_tiles=False):
    """Batch tiling: tm multiple of 8 sublanes, up to 256 rows.

    tm up to 256 fills the 256-wide MXUs on v6e/v7x and (more importantly)
    halves the per-batch-tile re-streaming of wb from HBM.  When `two_tiles`
    is set (v7x, 2 TensorCores) and the batch allows it, split into two tiles
    so the "parallel" batch axis shards across both cores.
    """
    B_pad = _round_up(B, 8)
    if B_pad <= 256:
        if two_tiles and B_pad >= 16 and B_pad % 16 == 0:
            return B_pad, B_pad // 2
        return B_pad, B_pad
    sub = B_pad // 8
    best = 1
    for m in range(1, 33):          # tm = 8*m <= 256
        if sub % m == 0:
            best = m
    return B_pad, 8 * best


def _feature_tiling(F):
    """Lane-aligned reduction tiling over the flattened backbone-input axis.

    Prefers a tile that divides F exactly (no x padding pass in the wrapper);
    otherwise F is padded up and the wrapper zero-pads x columns once.
    """
    F_lane = _round_up(F, 128)
    if F_lane <= _TK_TARGET:
        return F_lane, F_lane
    if F % 128 == 0:
        # largest multiple-of-128 divisor of F that is <= _TK_TARGET
        for m in range(_TK_TARGET // 128, 0, -1):
            if (F // 128) % m == 0:
                tk = 128 * m
                if tk >= 1024:      # big enough to amortize per-step overhead
                    return F, tk
                break
    return _round_up(F, _TK_TARGET), _TK_TARGET


# ----------------------------------------------------------------------------
# Fused kernel
#   grid = (batch_tiles, F_tiles)   [F axis = reduction over the flattened
#                                    backbone input]
#   k == 0    : acc = broadcast(backbone bias)          (bias folded into init)
#   every k   : acc += x_tile(bf16 cast in-kernel) @ wb_tile(bf16)  (f32 acc)
#   k == last : feat = relu(acc)
#               proj = (feat - mean) * inv_std           (f32)
#               out  = proj(bf16) @ W_g.T(bf16) + b_g    (f32 accumulate)
#
#   stats_ref rows: 0 = backbone bias, 1 = proj_mean, 2 = 1/proj_std
# ----------------------------------------------------------------------------
def _fused_kernel(x_ref, wb_ref, stats_ref, wgt_ref, bg_ref,
                  out_ref, proj_ref, acc_ref):
    k = pl.program_id(1)

    @pl.when(k == 0)
    def _init():
        acc_ref[...] = jnp.broadcast_to(stats_ref[0:1, :], acc_ref.shape)

    acc_ref[...] += jnp.dot(x_ref[...].astype(jnp.bfloat16), wb_ref[...],
                            preferred_element_type=jnp.float32)

    @pl.when(k == pl.num_programs(1) - 1)
    def _finalize():
        feat = jnp.maximum(acc_ref[...], 0.0)                   # backbone ReLU
        proj = (feat - stats_ref[1:2, :]) * stats_ref[2:3, :]   # f32 normalize
        proj_ref[...] = proj
        out_ref[...] = (
            jnp.dot(proj.astype(jnp.bfloat16), wgt_ref[...],
                    preferred_element_type=jnp.float32)
            + bg_ref[...]
        )


# ----------------------------------------------------------------------------
# One-time parameter preparation (hoisted out of the per-call wrapper):
# pad lane dims to 128, pre-transpose W_g, precompute 1/std, cast MXU
# operands to bf16, stack the three small D-wide vectors into one operand.
# Zero padding is exact (contributes nothing to the dots).
# ----------------------------------------------------------------------------
def prepare_params(params):
    wb = jnp.asarray(params["wb"], jnp.float32)
    bb = jnp.asarray(params["bb"], jnp.float32)
    W_g = jnp.asarray(params["W_g"], jnp.float32)
    b_g = jnp.asarray(params["b_g"], jnp.float32)
    mean = jnp.asarray(params["proj_mean"], jnp.float32)
    std = jnp.asarray(params["proj_std"], jnp.float32)

    F, D = wb.shape
    K = W_g.shape[0]
    D_pad = _round_up(D, 128)
    K_pad = _round_up(K, 128)
    F_pad, _ = _feature_tiling(F)

    wb_p = jnp.pad(wb.astype(jnp.bfloat16), ((0, F_pad - F), (0, D_pad - D)))
    wgt_p = jnp.pad(W_g.T.astype(jnp.bfloat16), ((0, D_pad - D), (0, K_pad - K)))
    bg_p = jnp.pad(b_g.reshape(1, -1), ((0, 0), (0, K_pad - K)))

    # bb / proj_mean / 1/proj_std stacked into a single sublane-padded operand
    stats = jnp.zeros((8, D_pad), jnp.float32)
    stats = stats.at[0, :D].set(bb)
    stats = stats.at[1, :D].set(mean)
    stats = stats.at[2, :D].set(1.0 / std)

    return {"wb": wb_p, "stats": stats, "wgt": wgt_p, "bg": bg_p, "D": D, "K": K}


# ----------------------------------------------------------------------------
# Forward wrapper (jitted; minimal padding + one pallas_call + output slicing)
# ----------------------------------------------------------------------------
@functools.partial(jax.jit, static_argnames=("D", "K"))
def _forward_impl(x_nchw, wb, stats, wgt, bg, *, D, K):
    B = x_nchw.shape[0]
    x_flat = x_nchw.reshape(B, -1)            # torch.flatten(x, 1) ordering
    F = x_flat.shape[1]
    F_pad, D_pad = wb.shape
    K_pad = wgt.shape[1]

    B_pad, tm = _batch_tiling(B, two_tiles=(_num_tensorcores_per_chip() >= 2))
    F_pad_chk, tk = _feature_tiling(F)
    assert F_pad_chk == F_pad, "parameters were prepared for a different F"

    # Keep x in its input dtype (the bf16 MXU cast happens inside the kernel,
    # avoiding a full extra HBM pass over x).  Pad only when actually needed.
    pad_b, pad_f = B_pad - B, F_pad - F
    if pad_b or pad_f:
        x_flat = jnp.pad(x_flat, ((0, pad_b), (0, pad_f)))

    # Right-sized VMEM budget: double-buffered tiles + accumulator + 25%.
    xbytes = jnp.dtype(x_flat.dtype).itemsize
    working = 2 * (tm * tk * xbytes            # x tile
                   + tk * D_pad * 2            # wb tile (bf16)
                   + 8 * D_pad * 4             # stats
                   + D_pad * K_pad * 2         # W_g.T (bf16)
                   + K_pad * 4                 # b_g
                   + tm * K_pad * 4            # out tile
                   + tm * D_pad * 4)           # proj tile
    working += tm * D_pad * 4                  # feat accumulator scratch
    vmem_limit = max(int(working * 1.25), 16 * 1024 * 1024)

    grid = (B_pad // tm, F_pad // tk)
    out_p, proj_p = pl.pallas_call(
        _fused_kernel,
        out_shape=(
            jax.ShapeDtypeStruct((B_pad, K_pad), jnp.float32),
            jax.ShapeDtypeStruct((B_pad, D_pad), jnp.float32),
        ),
        grid_spec=pltpu.PrefetchScalarGridSpec(
            num_scalar_prefetch=0,
            grid=grid,
            in_specs=[
                pl.BlockSpec((tm, tk), lambda i, k: (i, k)),        # x tile
                pl.BlockSpec((tk, D_pad), lambda i, k: (k, 0)),     # wb tile
                pl.BlockSpec((8, D_pad), lambda i, k: (0, 0)),      # bb/mean/inv_std
                pl.BlockSpec((D_pad, K_pad), lambda i, k: (0, 0)),  # W_g.T
                pl.BlockSpec((1, K_pad), lambda i, k: (0, 0)),      # b_g
            ],
            out_specs=[
                pl.BlockSpec((tm, K_pad), lambda i, k: (i, 0)),     # out
                pl.BlockSpec((tm, D_pad), lambda i, k: (i, 0)),     # proj_c
            ],
            scratch_shapes=[pltpu.VMEM((tm, D_pad), jnp.float32)],  # feat acc
        ),
        compiler_params=pltpu.CompilerParams(
            dimension_semantics=("parallel", "arbitrary"),
            vmem_limit_bytes=vmem_limit,
        ),
    )(x_flat, wb, stats, wgt, bg)

    return out_p[:B, :K], proj_p[:B, :D]


def standard_model_forward(x_nchw, prep):
    return _forward_impl(x_nchw, prep["wb"], prep["stats"], prep["wgt"],
                         prep["bg"], D=prep["D"], K=prep["K"])


# ----------------------------------------------------------------------------
# Reference (same precision choices: bf16 MXU operands, f32 accumulate,
# f32 elementwise) so the comparison tolerance stays tight.
# ----------------------------------------------------------------------------
def _reference_forward(x_nchw, params):
    B = x_nchw.shape[0]
    x_flat = x_nchw.reshape(B, -1)
    feat = jnp.maximum(
        jnp.dot(x_flat.astype(jnp.bfloat16), params["wb"].astype(jnp.bfloat16),
                preferred_element_type=jnp.float32)
        + params["bb"].reshape(1, -1),
        0.0,
    )
    proj_c = (feat - params["proj_mean"]) * (1.0 / params["proj_std"])
    out = jnp.dot(proj_c.astype(jnp.bfloat16),
                  params["W_g"].T.astype(jnp.bfloat16),
                  preferred_element_type=jnp.float32) + params["b_g"]
    return out, proj_c


if __name__ == "__main__":
    # small shapes: batch=2, channels=4, spatial=16x16, feature dim D=32, classes K=8
    B, C, H, W = 2, 4, 16, 16
    D, K = 32, 8
    F = C * H * W

    key = jax.random.PRNGKey(0)
    kx, kwb, kbb, kwg, kbg, kmean, kstd = jax.random.split(key, 7)

    x = jax.random.normal(kx, (B, C, H, W), dtype=jnp.float32)

    params = {
        # synthetic backbone weights (stand-in, see TODO above)
        "wb": jax.random.normal(kwb, (F, D), dtype=jnp.float32) * 0.02,
        "bb": jax.random.normal(kbb, (D,), dtype=jnp.float32) * 0.1,
        # head: final Linear(W_g, b_g) and projection statistics
        "W_g": jax.random.normal(kwg, (K, D), dtype=jnp.float32) * 0.1,
        "b_g": jax.random.normal(kbg, (K,), dtype=jnp.float32) * 0.1,
        "proj_mean": jax.random.normal(kmean, (D,), dtype=jnp.float32) * 0.05,
        "proj_std": jnp.abs(jax.random.normal(kstd, (D,), dtype=jnp.float32)) + 0.5,
    }

    prep = prepare_params(params)   # one-time: pad / transpose / cast / 1/std / stack

    out, proj_c = standard_model_forward(x, prep)
    out = jax.block_until_ready(out)
    proj_c = jax.block_until_ready(proj_c)

    ref_out, ref_proj = _reference_forward(x, params)
    assert out.shape == (B, K) and proj_c.shape == (B, D)
    assert jnp.allclose(proj_c, ref_proj, atol=5e-3, rtol=5e-3), \
        float(jnp.max(jnp.abs(proj_c - ref_proj)))
    assert jnp.allclose(out, ref_out, atol=5e-3, rtol=5e-3), \
        float(jnp.max(jnp.abs(out - ref_out)))

    print("KERNEL_OK")
</pallas_src>

<mosaic_0001>
module attributes {stable_mosaic.version = 11 : i64} {
  func.func @_fused_kernel(%arg0: i32, %arg1: i32, %arg2: memref<8x1024xf32, #tpu.memory_space<vmem>>, %arg3: memref<1024x128xbf16, #tpu.memory_space<vmem>>, %arg4: memref<8x128xf32, #tpu.memory_space<vmem>>, %arg5: memref<128x128xbf16, #tpu.memory_space<vmem>>, %arg6: memref<1x128xf32, #tpu.memory_space<vmem>>, %arg7: memref<8x128xf32, #tpu.memory_space<vmem>>, %arg8: memref<8x128xf32, #tpu.memory_space<vmem>>, %arg9: memref<8x128xf32, #tpu.memory_space<vmem>>) attributes {dimension_semantics = [#tpu.dimension_semantics<parallel>, #tpu.dimension_semantics<arbitrary>], iteration_bounds = array<i64: 1, 1>, scalar_prefetch = 0 : i64, scratch_operands = 1 : i64, tpu.core_type = #tpu.core_type<tc>, window_params = [{transform_indices = @transform_0, window_bounds = array<i64: 8, 1024>}, {transform_indices = @transform_1, window_bounds = array<i64: 1024, 128>}, {pipeline_mode = #tpu.pipeline_mode<synchronous>, transform_indices = @transform_2, window_bounds = array<i64: 8, 128>}, {pipeline_mode = #tpu.pipeline_mode<synchronous>, transform_indices = @transform_3, window_bounds = array<i64: 128, 128>}, {pipeline_mode = #tpu.pipeline_mode<synchronous>, transform_indices = @transform_4, window_bounds = array<i64: 1, 128>}, {transform_indices = @transform_5, window_bounds = array<i64: 8, 128>}, {transform_indices = @transform_6, window_bounds = array<i64: 8, 128>}]} {
    %c0_i32 = arith.constant 0 : i32
    %0 = arith.cmpi eq, %arg1, %c0_i32 : i32
    %1 = arith.extui %0 : i1 to i32
    %c0_i32_0 = arith.constant 0 : i32
    %2 = arith.cmpi ne, %1, %c0_i32_0 : i32
    scf.if %2 {
      %c0_10 = arith.constant 0 : index
      %c0_11 = arith.constant 0 : index
      %13 = vector.load %arg4[%c0_10, %c0_11] : memref<8x128xf32, #tpu.memory_space<vmem>>, vector<1x128xf32>
      %14 = vector.shape_cast %13 : vector<1x128xf32> to vector<1x128xf32>
      %15 = vector.broadcast %14 : vector<1x128xf32> to vector<8x128xf32>
      %c0_12 = arith.constant 0 : index
      %c0_13 = arith.constant 0 : index
      %16 = vector.load %arg9[%c0_12, %c0_13] : memref<8x128xf32, #tpu.memory_space<vmem>>, vector<8x128xf32>
      tpu.vector_store %arg9[%c0_12, %c0_13], %15 {strides = array<i32>} : memref<8x128xf32, #tpu.memory_space<vmem>>, vector<8x128xf32>,
    } else {
    }
    %c0 = arith.constant 0 : index
    %c0_1 = arith.constant 0 : index
    %3 = vector.load %arg9[%c0, %c0_1] : memref<8x128xf32, #tpu.memory_space<vmem>>, vector<8x128xf32>
    %c0_2 = arith.constant 0 : index
    %c0_3 = arith.constant 0 : index
    %4 = vector.load %arg2[%c0_2, %c0_3] : memref<8x1024xf32, #tpu.memory_space<vmem>>, vector<8x1024xf32>
    %5 = arith.truncf %4 : vector<8x1024xf32> to vector<8x1024xbf16>
    %c0_4 = arith.constant 0 : index
    %c0_5 = arith.constant 0 : index
    %6 = vector.load %arg3[%c0_4, %c0_5] : memref<1024x128xbf16, #tpu.memory_space<vmem>>, vector<1024x128xbf16>
    %cst = arith.constant dense<0.000000e+00> : vector<8x128xf32>
    %7 = tpu.matmul %5, %6, %cst {dimension_numbers = #tpu.dot_dimension_numbers<[1], [0], [0], [1], [0, 0, 1, 1], [], []>} : vector<8x1024xbf16>, vector<1024x128xbf16>, vector<8x128xf32> -> vector<8x128xf32>
    %8 = arith.addf %3, %7 : vector<8x128xf32>
    %c0_6 = arith.constant 0 : index
    %c0_7 = arith.constant 0 : index
    %9 = vector.load %arg9[%c0_6, %c0_7] : memref<8x128xf32, #tpu.memory_space<vmem>>, vector<8x128xf32>
    tpu.vector_store %arg9[%c0_6, %c0_7], %8 {strides = array<i32>} : memref<8x128xf32, #tpu.memory_space<vmem>>, vector<8x128xf32>,
    %c0_i32_8 = arith.constant 0 : i32
    %10 = arith.cmpi eq, %arg1, %c0_i32_8 : i32
    %11 = arith.extui %10 : i1 to i32
    %c0_i32_9 = arith.constant 0 : i32
    %12 = arith.cmpi ne, %11, %c0_i32_9 : i32
    scf.if %12 {
      %c0_10 = arith.constant 0 : index
      %c0_11 = arith.constant 0 : index
      %13 = vector.load %arg9[%c0_10, %c0_11] : memref<8x128xf32, #tpu.memory_space<vmem>>, vector<8x128xf32>
      %cst_12 = arith.constant 0.000000e+00 : f32
      %14 = vector.broadcast %cst_12 : f32 to vector<8x128xf32>
      %15 = arith.maximumf %13, %14 : vector<8x128xf32>
      %c1 = arith.constant 1 : index
      %c0_13 = arith.constant 0 : index
      %16 = vector.load %arg4[%c1, %c0_13] : memref<8x128xf32, #tpu.memory_space<vmem>>, vector<1x128xf32>
      %17 = vector.broadcast %16 : vector<1x128xf32> to vector<8x128xf32>
      %18 = arith.subf %15, %17 : vector<8x128xf32>
      %c2 = arith.constant 2 : index
      %c0_14 = arith.constant 0 : index
      %19 = vector.load %arg4[%c2, %c0_14] : memref<8x128xf32, #tpu.memory_space<vmem>>, vector<1x128xf32>
      %20 = vector.broadcast %19 : vector<1x128xf32> to vector<8x128xf32>
      %21 = arith.mulf %18, %20 : vector<8x128xf32>
      %c0_15 = arith.constant 0 : index
      %c0_16 = arith.constant 0 : index
      %22 = vector.load %arg8[%c0_15, %c0_16] : memref<8x128xf32, #tpu.memory_space<vmem>>, vector<8x128xf32>
      tpu.vector_store %arg8[%c0_15, %c0_16], %21 {strides = array<i32>} : memref<8x128xf32, #tpu.memory_space<vmem>>, vector<8x128xf32>,
      %23 = arith.truncf %21 : vector<8x128xf32> to vector<8x128xbf16>
      %c0_17 = arith.constant 0 : index
      %c0_18 = arith.constant 0 : index
      %24 = vector.load %arg5[%c0_17, %c0_18] : memref<128x128xbf16, #tpu.memory_space<vmem>>, vector<128x128xbf16>
      %cst_19 = arith.constant dense<0.000000e+00> : vector<8x128xf32>
      %25 = tpu.matmul %23, %24, %cst_19 {dimension_numbers = #tpu.dot_dimension_numbers<[1], [0], [0], [1], [0, 0, 1, 1], [], []>} : vector<8x128xbf16>, vector<128x128xbf16>, vector<8x128xf32> -> vector<8x128xf32>
      %c0_20 = arith.constant 0 : index
      %c0_21 = arith.constant 0 : index
      %26 = vector.load %arg6[%c0_20, %c0_21] : memref<1x128xf32, #tpu.memory_space<vmem>>, vector<1x128xf32>
      %27 = vector.broadcast %26 : vector<1x128xf32> to vector<8x128xf32>
      %28 = arith.addf %25, %27 : vector<8x128xf32>
      %c0_22 = arith.constant 0 : index
      %c0_23 = arith.constant 0 : index
      %29 = vector.load %arg7[%c0_22, %c0_23] : memref<8x128xf32, #tpu.memory_space<vmem>>, vector<8x128xf32>
      tpu.vector_store %arg7[%c0_22, %c0_23], %28 {strides = array<i32>} : memref<8x128xf32, #tpu.memory_space<vmem>>, vector<8x128xf32>,
    } else {
    }
    return
  }
  func.func @transform_0(%arg0: i32, %arg1: i32) -> (i32, i32) {
    %c0_i32 = arith.constant 0 : i32
    return %arg0, %arg1 : i32, i32
  }
  func.func @transform_1(%arg0: i32, %arg1: i32) -> (i32, i32) {
    %c0_i32 = arith.constant 0 : i32
    %c0_i32_0 = arith.constant 0 : i32
    return %arg1, %c0_i32 : i32, i32
  }
  func.func @transform_2(%arg0: i32, %arg1: i32) -> (i32, i32) {
    %c0_i32 = arith.constant 0 : i32
    %c0_i32_0 = arith.constant 0 : i32
    %c0_i32_1 = arith.constant 0 : i32
    return %c0_i32, %c0_i32_0 : i32, i32
  }
  func.func @transform_3(%arg0: i32, %arg1: i32) -> (i32, i32) {
    %c0_i32 = arith.constant 0 : i32
    %c0_i32_0 = arith.constant 0 : i32
    %c0_i32_1 = arith.constant 0 : i32
    return %c0_i32, %c0_i32_0 : i32, i32
  }
  func.func @transform_4(%arg0: i32, %arg1: i32) -> (i32, i32) {
    %c0_i32 = arith.constant 0 : i32
    %c0_i32_0 = arith.constant 0 : i32
    %c0_i32_1 = arith.constant 0 : i32
    return %c0_i32, %c0_i32_0 : i32, i32
  }
  func.func @transform_5(%arg0: i32, %arg1: i32) -> (i32, i32) {
    %c0_i32 = arith.constant 0 : i32
    %c0_i32_0 = arith.constant 0 : i32
    return %arg0, %c0_i32 : i32, i32
  }
  func.func @transform_6(%arg0: i32, %arg1: i32) -> (i32, i32) {
    %c0_i32 = arith.constant 0 : i32
    %c0_i32_0 = arith.constant 0 : i32
    return %arg0, %c0_i32 : i32, i32
  }
}

</mosaic_0001>

<bundles_post_ra>
// kernel: _forward_impl.1
= control target key start
LH: loop header
LB: loop body
LE: loop exit
PB: predicated region body
PF: predicated region fallthrough
CT: control target
= control target key end

     0   :  { %12 = vsyncpa [#allocation4], 0  ;;  %s1172_s21 = smov [#allocation3]   ;;  %s1290_s0 = inlined_call_operand.vmem [shape: f32[8,1024], index: 0, kind: input, shape index: {}]   ;;  %s1291_s1 = inlined_call_operand.hbm [shape: bf16[1024,128], index: 1, kind: input, shape index: {}]   ;;  %s1292_s2 = inlined_call_operand.vmem [shape: f32[8,128], index: 2, kind: input, shape index: {}]   ;;  %s1293_s3 = inlined_call_operand.vmem [shape: bf16[128,128], index: 3, kind: input, shape index: {}]   ;;  %s1294_s4 = inlined_call_operand.vmem [shape: f32[1,128], index: 4, kind: input, shape index: {}]   ;;  %s1295_s5 = inlined_call_operand.vmem [shape: f32[8,128], index: 5, kind: output, shape index: {0}]   ;;  %s1296_s6 = inlined_call_operand.vmem [shape: f32[8,128], index: 6, kind: output, shape index: {1}]  }
   0x1   :  { %s20_s22 = sshll.u32 %s1172_s21, 4  ;;  %s1148_s25 = scalar_lea.hbm %s1291_s1, 8192  ;;  %s21_s22 = int_to_ptr.vmem [resolvable:$true] %s20_s22 }
   0x2   :  { %p1149_p0 = scmp.ne.s32.totalorder %s1291_s1, %s1148_s25  ;;  %p1152_p1 = scmp.lt.u32.totalorder %s1148_s25, %s1291_s1 }
   0x4   :  { %p1154_p2 = pnand %p1152_p1, %p1149_p0 }
   0x6   :  { %1157 = shalt.err (!%p1154_p2)
}
   0x7   :  { %s1158_s30 = scalar_lea.vmem %s21_s22, 8192  ;;  %p1163_p4 = scmp.lt.s32.totalorder %s21_s22, %s21_s22 }
   0x8   :  { %p1159_p3 = scmp.ne.s32.totalorder %s21_s22, %s1158_s30  ;;  %p1164_p5 = scmp.lt.s32.totalorder %s1158_s30, %s1158_s30 }
   0xa   :  { %p1165_p6 = por %p1164_p5, %p1163_p4 }
   0xc   :  { %p1166_p7 = pnand %p1165_p6, %p1159_p3 }
   0xe   :  { %1169 = shalt.err (!%p1166_p7)
}
   0xf   :  { %s1173_s7 = smov 64   ;;  %s1174_s8 = smov 4  }
  0x10   :  { %26 = dma.hbm_to_vmem [thread:$0]  %s1291_s1, 8192, %s21_s22, [#allocation4], %s1173_s7, %s1173_s7, %s1174_s8  }
  0x11   :  { %1170 = dma.done.wait [#allocation4], 8192  }
  0x12   :  { %1171 = vsyncadd [#allocation4], 4294959104  ;;  %v1076_v0 = vld [vmem:[#allocation3 + $0x40] sm:$0xff]   ;;  %v1080_v4 = vld [vmem:[#allocation3 + $0x48] sm:$0xff]   ;;  %vm1176_vm0 = vmmov 0  }
  0x13   :  { %v1077_v1 = vld [vmem:[#allocation3 + $0xc0] sm:$0xff]   ;;  %954 = vmatprep.subr.bf16.mxu0 %v1076_v0  ;;  %v1081_v5 = vld [vmem:[#allocation3 + $0xc8] sm:$0xff]   ;;  %v1084_v8 = vld [vmem:[#allocation3 + $0x50] sm:$0xff]  }
  0x14   :  { %v1078_v2 = vld [vmem:[#allocation3] sm:$0xff]   ;;  %976 = vmatprep.subr.bf16.mxu1 %v1077_v1  ;;  %v1082_v6 = vld [vmem:[#allocation3 + $0x8] sm:$0xff]   ;;  %v1085_v9 = vld [vmem:[#allocation3 + $0xd0] sm:$0xff]  }
  0x15   :  { %v1079_v3 = vld [vmem:[#allocation3 + $0x80] sm:$0xff]   ;;  %955 = vmatpush3.bf16.msra.mxu0 %v1078_v2  ;;  %v1083_v7 = vld [vmem:[#allocation3 + $0x88] sm:$0xff]   ;;  %v1086_v10 = vld [vmem:[#allocation3 + $0x10] sm:$0xff]  }
  0x16   :  { %977 = vmatpush3.bf16.msra.mxu1 %v1079_v3  ;;  %956 = vmatprep.subr.bf16.mxu0 %v1080_v4  ;;  %v1087_v11 = vld [vmem:[#allocation3 + $0x90] sm:$0xff]   ;;  %v1088_v12 = vld [vmem:[#allocation3 + $0x58] sm:$0xff]   ;;  %v1092_v16 = vld [vmem:[#allocation3 + $0x60] sm:$0xff]  }
  0x17   :  { %978 = vmatprep.subr.bf16.mxu1 %v1081_v5  ;;  %v1089_v13 = vld [vmem:[#allocation3 + $0xd8] sm:$0xff]   ;;  %v1093_v17 = vld [vmem:[#allocation3 + $0xe0] sm:$0xff]   ;;  %v1096_v20 = vld [vmem:[#allocation3 + $0x68] sm:$0xff]  }
  0x18   :  { %v1090_v14 = vld [vmem:[#allocation3 + $0x18] sm:$0xff]   ;;  %v1094_v18 = vld [vmem:[#allocation3 + $0x20] sm:$0xff]   ;;  %v1097_v21 = vld [vmem:[#allocation3 + $0xe8] sm:$0xff]  }
  0x19   :  { %957 = vmatpush3.bf16.msra.mxu0 %v1082_v6  ;;  %v1091_v15 = vld [vmem:[#allocation3 + $0x98] sm:$0xff]   ;;  %v1095_v19 = vld [vmem:[#allocation3 + $0xa0] sm:$0xff]   ;;  %v1098_v22 = vld [vmem:[#allocation3 + $0x28] sm:$0xff]  }
  0x1a   :  { %979 = vmatpush3.bf16.msra.mxu1 %v1083_v7  ;;  %958 = vmatprep.subr.bf16.mxu0 %v1084_v8  ;;  %v1099_v23 = vld [vmem:[#allocation3 + $0xa8] sm:$0xff]   ;;  %v1100_v24 = vld [vmem:[#allocation3 + $0x70] sm:$0xff]   ;;  %v1104_v28 = vld [vmem:[#allocation3 + $0x78] sm:$0xff]  }
  0x1b   :  { %980 = vmatprep.subr.bf16.mxu1 %v1085_v9  ;;  %v1101_v25 = vld [vmem:[#allocation3 + $0xf0] sm:$0xff]   ;;  %v1105_v29 = vld [vmem:[#allocation3 + $0xf8] sm:$0xff]   ;;  %v49_v32 = vld [vmem:[%s1290_s0 + $0x8] sm:$0xff] }
  0x1c   :  { %v1102_v26 = vld [vmem:[#allocation3 + $0x30] sm:$0xff]   ;;  %v1106_v30 = vld [vmem:[#allocation3 + $0x38] sm:$0xff]   ;;  %v48_v34 = vld [vmem:[%s1290_s0] sm:$0xff]  ;;  %v57_v35 = vpack.c.bf16 %v49_v32, %v49_v32 }
  0x1d   :  { %959 = vmatpush3.bf16.msra.mxu0 %v1086_v10  ;;  %v1103_v27 = vld [vmem:[#allocation3 + $0xb0] sm:$0xff]   ;;  %v1107_v31 = vld [vmem:[#allocation3 + $0xb8] sm:$0xff]   ;;  %v56_v37 = vpack.c.bf16 %v48_v34, %v48_v34  ;;  %v1108_v40 = vld [vmem:[#allocation3 + $0x140] sm:$0xff]  }
  0x1e   :  { %981 = vmatpush3.bf16.msra.mxu1 %v1087_v11  ;;  %960 = vmatprep.subr.bf16.mxu0 %v1088_v12  ;;  %v51_v33 = vld [vmem:[%s1290_s0 + $0x18] sm:$0xff]  ;;  %v50_v38 = vld [vmem:[%s1290_s0 + $0x10] sm:$0xff]  ;;  %v1109_v41 = vld [vmem:[#allocation3 + $0x1c0] sm:$0xff]  }
  0x1f   :  { %982 = vmatprep.subr.bf16.mxu1 %v1089_v13  ;;  %v59_v36 = vpack.c.bf16 %v51_v33, %v51_v33  ;;  %v58_v39 = vpack.c.bf16 %v50_v38, %v50_v38  ;;  %608 = vmatprep.mubr.bf16.mxu0 %v57_v35  ;;  %v1110_v42 = vld [vmem:[#allocation3 + $0x100] sm:$0xff]   ;;  %v1112_v44 = vld [vmem:[#allocation3 + $0x148] sm:$0xff]   ;;  %v1116_v48 = vld [vmem:[#allocation3 + $0x150] sm:$0xff]  }
  0x20   :  { %v1111_v43 = vld [vmem:[#allocation3 + $0x180] sm:$0xff]   ;;  %v1113_v45 = vld [vmem:[#allocation3 + $0x1c8] sm:$0xff]   ;;  %v1117_v49 = vld [vmem:[#allocation3 + $0x1d0] sm:$0xff]  }
  0x21   :  { %961 = vmatpush3.bf16.msra.mxu0 %v1090_v14  ;;  %648 = vmatprep.mubr.bf16.mxu1 %v59_v36  ;;  %v1114_v46 = vld [vmem:[#allocation3 + $0x108] sm:$0xff]   ;;  %v1118_v50 = vld [vmem:[#allocation3 + $0x110] sm:$0xff]   ;;  %v1120_v52 = vld [vmem:[#allocation3 + $0x158] sm:$0xff]  }
  0x22   :  { %983 = vmatpush3.bf16.msra.mxu1 %v1091_v15  ;;  %962 = vmatprep.subr.bf16.mxu0 %v1092_v16  ;;  %v1115_v47 = vld [vmem:[#allocation3 + $0x188] sm:$0xff]   ;;  %v1119_v51 = vld [vmem:[#allocation3 + $0x190] sm:$0xff]   ;;  %v1121_v53 = vld [vmem:[#allocation3 + $0x1d8] sm:$0xff]  }
  0x23   :  { %984 = vmatprep.subr.bf16.mxu1 %v1093_v17  ;;  %v1122_v54 = vld [vmem:[#allocation3 + $0x118] sm:$0xff]   ;;  %v1124_v56 = vld [vmem:[#allocation3 + $0x160] sm:$0xff]   ;;  %v1128_v60 = vld [vmem:[#allocation3 + $0x168] sm:$0xff]   ;;  %v1175_v17 = vmov 0.0  }
  0x24   :  { %v1123_v55 = vld [vmem:[#allocation3 + $0x198] sm:$0xff]   ;;  %v1125_v57 = vld [vmem:[#allocation3 + $0x1e0] sm:$0xff]   ;;  %v1129_v61 = vld [vmem:[#allocation3 + $0x1e8] sm:$0xff]  }
  0x25   :  { %963 = vmatpush3.bf16.msra.mxu0 %v1094_v18  ;;  %v1126_v58 = vld [vmem:[#allocation3 + $0x120] sm:$0xff]   ;;  %v1130_v62 = vld [vmem:[#allocation3 + $0x128] sm:$0xff]   ;;  %v1132_v0 = vld [vmem:[#allocation3 + $0x170] sm:$0xff]  }
  0x26   :  { %985 = vmatpush3.bf16.msra.mxu1 %v1095_v19  ;;  %964 = vmatprep.subr.bf16.mxu0 %v1096_v20  ;;  %v1127_v59 = vld [vmem:[#allocation3 + $0x1a0] sm:$0xff]   ;;  %v1131_v63 = vld [vmem:[#allocation3 + $0x1a8] sm:$0xff]   ;;  %v1133_v1 = vld [vmem:[#allocation3 + $0x1f0] sm:$0xff]  }
  0x27   :  { %986 = vmatprep.subr.bf16.mxu1 %v1097_v21  ;;  %v1134_v2 = vld [vmem:[#allocation3 + $0x130] sm:$0xff]   ;;  %v1136_v4 = vld [vmem:[#allocation3 + $0x178] sm:$0xff]   ;;  %v53_v8 = vld [vmem:[%s1290_s0 + $0x28] sm:$0xff] }
  0x28   :  { %v1135_v3 = vld [vmem:[#allocation3 + $0x1b0] sm:$0xff]   ;;  %v1137_v5 = vld [vmem:[#allocation3 + $0x1f8] sm:$0xff]   ;;  %v61_v10 = vpack.c.bf16 %v53_v8, %v53_v8  ;;  %v52_v12 = vld [vmem:[%s1290_s0 + $0x20] sm:$0xff] }
  0x29   :  { %965 = vmatpush3.bf16.msra.mxu0 %v1098_v22  ;;  %v1138_v6 = vld [vmem:[#allocation3 + $0x138] sm:$0xff]   ;;  %v54_v13 = vld [vmem:[%s1290_s0 + $0x30] sm:$0xff]  ;;  %v60_v14 = vpack.c.bf16 %v52_v12, %v52_v12  ;;  %v1140_v16 = vld [vmem:[%s1293_s3] sm:$0xff]  }
  0x2a   :  { %987 = vmatpush3.bf16.msra.mxu1 %v1099_v23  ;;  %966 = vmatprep.subr.bf16.mxu0 %v1100_v24  ;;  %v1139_v7 = vld [vmem:[#allocation3 + $0x1b8] sm:$0xff]   ;;  %v62_v15 = vpack.c.bf16 %v54_v13, %v54_v13  ;;  %v1141_v18 = vld [vmem:[%s1293_s3 + $0x8] sm:$0xff]   ;;  %v1142_v19 = vld [vmem:[%s1293_s3 + $0x10] sm:$0xff]  }
  0x2b   :  { %988 = vmatprep.subr.bf16.mxu1 %v1101_v25  ;;  %v55_v9 = vld [vmem:[%s1290_s0 + $0x38] sm:$0xff]  ;;  %v1144_v21 = vld [vmem:[%s1293_s3 + $0x20] sm:$0xff]   ;;  %v1145_v22 = vld [vmem:[%s1293_s3 + $0x28] sm:$0xff]  }
  0x2c   :  { %v63_v11 = vpack.c.bf16 %v55_v9, %v55_v9  ;;  %v1143_v20 = vld [vmem:[%s1293_s3 + $0x18] sm:$0xff]   ;;  %v1146_v23 = vld [vmem:[%s1293_s3 + $0x30] sm:$0xff]  }
  0x2d   :  { %967 = vmatpush3.bf16.msra.mxu0 %v1102_v26  ;;  %v1147_v24 = vld [vmem:[%s1293_s3 + $0x38] sm:$0xff]  }
  0x2e   :  { %989 = vmatpush3.bf16.msra.mxu1 %v1103_v27  ;;  %968 = vmatprep.subr.bf16.mxu0 %v1104_v28 }
  0x2f   :  { %990 = vmatprep.subr.bf16.mxu1 %v1105_v29 }
  0x31   :  { %969 = vmatpush3.bf16.msra.mxu0 %v1106_v30 }
  0x32   :  { %991 = vmatpush3.bf16.msra.mxu1 %v1107_v31  ;;  %998 = vmatprep.subr.bf16.mxu0 %v1108_v40 }
  0x33   :  { %1020 = vmatprep.subr.bf16.mxu1 %v1109_v41 }
  0x34   :  { %609 = vmatmul.mubr.bf16.vlgmr.msra.gmra.mrb[0].mxu0 %v56_v37 }
  0x35   :  { %649 = vmatmul.mubr.bf16.vlgmr.msra.gmra.mrb[0].mxu1 %v58_v39  ;;  %999 = vmatpush3.bf16.msra.mxu0 %v1110_v42 }
  0x36   :  { %1021 = vmatpush3.bf16.msra.mxu1 %v1111_v43  ;;  %1000 = vmatprep.subr.bf16.mxu0 %v1112_v44 }
  0x37   :  { %1022 = vmatprep.subr.bf16.mxu1 %v1113_v45  ;;  %688 = vmatprep.mubr.bf16.mxu0 %v61_v10 }
  0x38   :  { %728 = vmatprep.mubr.bf16.mxu1 %v63_v11 }
  0x39   :  { %1001 = vmatpush3.bf16.msra.mxu0 %v1114_v46 }
  0x3a   :  { %1023 = vmatpush3.bf16.msra.mxu1 %v1115_v47  ;;  %1002 = vmatprep.subr.bf16.mxu0 %v1116_v48  ;;  %v878_v47 = vld [vmem:[%s1292_s2] ss:$0 sm:$0xff] }
  0x3b   :  { %1024 = vmatprep.subr.bf16.mxu1 %v1117_v49 }
  0x3d   :  { %1003 = vmatpush3.bf16.msra.mxu0 %v1118_v50  ;;  %v943_v50 = vld [vmem:[%s1292_s2 + $0x1] ss:$0 sm:$0xff] }
  0x3e   :  { %1025 = vmatpush3.bf16.msra.mxu1 %v1119_v51  ;;  %1004 = vmatprep.subr.bf16.mxu0 %v1120_v52  ;;  %v944_v52 = vld [vmem:[%s1292_s2 + $0x2] ss:$0 sm:$0xff] }
  0x3f   :  { %1026 = vmatprep.subr.bf16.mxu1 %v1121_v53 }
  0x41   :  { %1005 = vmatpush3.bf16.msra.mxu0 %v1122_v54 }
  0x42   :  { %1027 = vmatpush3.bf16.msra.mxu1 %v1123_v55  ;;  %1006 = vmatprep.subr.bf16.mxu0 %v1124_v56  ;;  %v945_v56 = vld [vmem:[%s1294_s4] ss:$0 sm:$0xff] }
  0x43   :  { %1028 = vmatprep.subr.bf16.mxu1 %v1125_v57 }
  0x45   :  { %1007 = vmatpush3.bf16.msra.mxu0 %v1126_v58 }
  0x46   :  { %1029 = vmatpush3.bf16.msra.mxu1 %v1127_v59  ;;  %1008 = vmatprep.subr.bf16.mxu0 %v1128_v60 }
  0x47   :  { %1030 = vmatprep.subr.bf16.mxu1 %v1129_v61 }
  0x49   :  { %1009 = vmatpush3.bf16.msra.mxu0 %v1130_v62 }
  0x4a   :  { %1031 = vmatpush3.bf16.msra.mxu1 %v1131_v63  ;;  %1010 = vmatprep.subr.bf16.mxu0 %v1132_v0 }
  0x4b   :  { %1032 = vmatprep.subr.bf16.mxu1 %v1133_v1 }
  0x4d   :  { %1011 = vmatpush3.bf16.msra.mxu0 %v1134_v2 }
  0x4e   :  { %1033 = vmatpush3.bf16.msra.mxu1 %v1135_v3  ;;  %1012 = vmatprep.subr.bf16.mxu0 %v1136_v4 }
  0x4f   :  { %1034 = vmatprep.subr.bf16.mxu1 %v1137_v5 }
  0x51   :  { %1013 = vmatpush3.bf16.msra.mxu0 %v1138_v6 }
  0x52   :  { %1035 = vmatpush3.bf16.msra.mxu1 %v1139_v7  ;;  %1051 = vmatprep.subr.bf16.mxu0 %v1175_v17 }
  0x54   :  { %689 = vmatmul.mubr.bf16.vlgmr.msra.gmra.mrb[4].mxu0 %v60_v14 }
  0x55   :  { %729 = vmatmul.mubr.bf16.vlgmr.msra.gmra.mrb[4].mxu1 %v62_v15  ;;  %1052 = vmatpush3.bf16.msra.mxu0 %v1140_v16 }
  0x56   :  { %1053 = vmatprep.subr.bf16.mxu0 %v1175_v17  ;;  %1067 = vmatprep.mubr.msk.bf16.mxu0 %vm1176_vm0, %v1175_v17 }
  0x59   :  { %1054 = vmatpush3.bf16.msra.mxu0 %v1141_v18 }
  0x5a   :  { %1055 = vmatprep.subr.bf16.mxu0 %v1175_v17 }
  0x5d   :  { %1056 = vmatpush3.bf16.msra.mxu0 %v1142_v19 }
  0x5e   :  { %1057 = vmatprep.subr.bf16.mxu0 %v1175_v17 }
  0x61   :  { %1058 = vmatpush3.bf16.msra.mxu0 %v1143_v20 }
  0x62   :  { %1059 = vmatprep.subr.bf16.mxu0 %v1175_v17 }
  0x65   :  { %1060 = vmatpush3.bf16.msra.mxu0 %v1144_v21 }
  0x66   :  { %1061 = vmatprep.subr.bf16.mxu0 %v1175_v17 }
  0x69   :  { %1062 = vmatpush3.bf16.msra.mxu0 %v1145_v22 }
  0x6a   :  { %1063 = vmatprep.subr.bf16.mxu0 %v1175_v17 }
  0x6d   :  { %1064 = vmatpush3.bf16.msra.mxu0 %v1146_v23 }
  0x6e   :  { %1065 = vmatprep.subr.bf16.mxu0 %v1175_v17 }
  0x71   :  { %1066 = vmatpush3.bf16.msra.mxu0 %v1147_v24 }
 0x107   :  { %v970_v25 = vpop.f32.mrb[0].mxu0 }
 0x108   :  { %v992_v26 = vpop.f32.mrb[0].mxu1  ;;  %v971_v27 = vpop.f32.mrb[1].mxu0 }
 0x109   :  { %v993_v28 = vpop.f32.mrb[1].mxu1  ;;  %v972_v29 = vadd.f32 %v971_v27, %v970_v25  ;;  %v973_v31 = vpop.f32.mrb[2].mxu0 }
 0x10a   :  { %v994_v30 = vadd.f32 %v993_v28, %v992_v26  ;;  %v995_v32 = vpop.f32.mrb[2].mxu1  ;;  %v974_v33 = vpop.f32.mrb[3].mxu0 }
 0x10b   :  { %v996_v34 = vpop.f32.mrb[3].mxu1 }
 0x10c   :  { %v651_v35 = vadd.f32 %v994_v30, %v972_v29 }
 0x127   :  { %v1014_v36 = vpop.f32.mrb[4].mxu0 }
 0x128   :  { %v1036_v37 = vpop.f32.mrb[4].mxu1  ;;  %v1015_v38 = vpop.f32.mrb[5].mxu0 }
 0x129   :  { %v1016_v39 = vadd.f32 %v1015_v38, %v1014_v36  ;;  %v1037_v40 = vpop.f32.mrb[5].mxu1  ;;  %v1017_v41 = vpop.f32.mrb[6].mxu0 }
 0x12a   :  { %v1038_v42 = vadd.f32 %v1037_v40, %v1036_v37  ;;  %v1039_v43 = vpop.f32.mrb[6].mxu1  ;;  %v1018_v44 = vpop.f32.mrb[7].mxu0 }
 0x12b   :  { %v691_v45 = vadd.f32 %v1016_v39, %v651_v35  ;;  %v1040_v46 = vpop.f32.mrb[7].mxu1 }
 0x12d   :  { %v731_v48 = vadd.f32 %v1038_v42, %v691_v45 }
 0x12f   :  { %v736_v49 = vadd.f32 %v878_v47, %v731_v48 }
 0x131   :  { %v742_v51 = vmax.f32 %v736_v49, 0.0 }
 0x133   :  { %v748_v53 = vsub.f32 %v742_v51, %v943_v50 }
 0x135   :  { %v754_v54 = vmul.f32 %v944_v52, %v748_v53 }
 0x137   :  { %755 = vst [vmem:[%s1296_s6] sm:$0xff] %v754_v54  ;;  %v756_v55 = vpack.c.bf16 %v754_v54, %v754_v54 }
 0x139   :  { %1068 = vmatmul.mubr.bf16.vlgmr.msra.gmra.mrb[8].mxu0 %v756_v55 }
 0x20c   :  { %v862_v57 = vpop.f32.mrb[8].mxu0 }
 0x20d   :  { %v863_v58 = vadd.f32 %v945_v56, %v862_v57  ;;  %v1069_v59 = vpop.f32.mrb[9].mxu0 }
 0x20e   :  { %v865_v60 = vpop.f32.mrb[10].mxu0 }
 0x20f   :  { %868 = vst [vmem:[%s1295_s5] sm:$0xff] %v863_v58  ;;  %v1070_v61 = vpop.f32.mrb[11].mxu0 }
 0x210   :  { %877 = vsyncpa [#allocation4], 1 }

</bundles_post_ra>
